<compile_context>
chip_gen: v5e
topology: v5e:2x2
jax: 0.10.0
libtpu: 0.0.40
codegen_flags: <defaults>
</compile_context>

<pallas_src>
import math

import jax
import jax.numpy as jnp
from jax.experimental import pallas as pl
from jax.experimental.pallas import tpu as pltpu


# --------------------------------------------------------------------------
# helpers
# --------------------------------------------------------------------------
def _round_up(x, m):
    return ((x + m - 1) // m) * m


def _sublane_multiple(dtype):
    """Second-minor tile multiple for a dtype: f32 -> 8, bf16 -> 16, int8/fp8 -> 32."""
    return max(8, 32 // jnp.dtype(dtype).itemsize)


def _largest_aligned_divisor(kp, cap):
    """Largest multiple of 128 that divides kp (itself a 128 multiple) and is <= cap."""
    q = kp // 128
    e_max = max(1, min(q, cap // 128))
    for e in range(e_max, 0, -1):
        if q % e == 0:
            return 128 * e
    return 128


def _vmem_capacity_bytes():
    """Per-core VMEM capacity; conservative 64 MiB (v7x-sized) fallback."""
    try:
        info = pltpu.get_tpu_info()
        cap = int(getattr(info, "vmem_capacity_bytes", 0))
        if cap > 0:
            return cap
    except Exception:  # pragma: no cover - query unsupported on this backend
        pass
    return 64 * 1024 * 1024


def _weight_block_spec(block_shape, index_map, buffers):
    """Weight BlockSpec; request >2 pipeline buffers for weight-streaming regimes."""
    if buffers > 2:
        try:
            return pl.BlockSpec(block_shape, index_map,
                                pipeline_mode=pl.Buffered(buffers))
        except Exception:  # pragma: no cover - jax without pipeline_mode support
            pass
    return pl.BlockSpec(block_shape, index_map)


# --------------------------------------------------------------------------
# kernels
# --------------------------------------------------------------------------
def _kernel_1k_bias(x_ref, w_ref, b_ref, o_ref):
    o_ref[...] = (
        jnp.dot(x_ref[...], w_ref[...], preferred_element_type=jnp.float32)
        + b_ref[...]
    ).astype(o_ref.dtype)


def _kernel_1k_nobias(x_ref, w_ref, o_ref):
    o_ref[...] = jnp.dot(
        x_ref[...], w_ref[...], preferred_element_type=jnp.float32
    ).astype(o_ref.dtype)


def _kernel_multik_accout_bias(x_ref, w_ref, b_ref, o_ref):
    """float32 output: accumulate directly into the resident output block."""
    k = pl.program_id(2)

    @pl.when(k == 0)
    def _():
        o_ref[...] = jnp.zeros_like(o_ref)

    o_ref[...] += jnp.dot(x_ref[...], w_ref[...], preferred_element_type=jnp.float32)

    @pl.when(k == pl.num_programs(2) - 1)
    def _():
        o_ref[...] += b_ref[...]


def _kernel_multik_accout_nobias(x_ref, w_ref, o_ref):
    k = pl.program_id(2)

    @pl.when(k == 0)
    def _():
        o_ref[...] = jnp.zeros_like(o_ref)

    o_ref[...] += jnp.dot(x_ref[...], w_ref[...], preferred_element_type=jnp.float32)


def _kernel_multik_scratch_bias(x_ref, w_ref, b_ref, o_ref, acc_ref):
    """Narrow output dtype: f32 scratch accumulator, cast once at the last k step."""
    k = pl.program_id(2)

    @pl.when(k == 0)
    def _():
        acc_ref[...] = jnp.zeros_like(acc_ref)

    acc_ref[...] += jnp.dot(x_ref[...], w_ref[...], preferred_element_type=jnp.float32)

    @pl.when(k == pl.num_programs(2) - 1)
    def _():
        o_ref[...] = (acc_ref[...] + b_ref[...]).astype(o_ref.dtype)


def _kernel_multik_scratch_nobias(x_ref, w_ref, o_ref, acc_ref):
    k = pl.program_id(2)

    @pl.when(k == 0)
    def _():
        acc_ref[...] = jnp.zeros_like(acc_ref)

    acc_ref[...] += jnp.dot(x_ref[...], w_ref[...], preferred_element_type=jnp.float32)

    @pl.when(k == pl.num_programs(2) - 1)
    def _():
        o_ref[...] = acc_ref[...].astype(o_ref.dtype)


# --------------------------------------------------------------------------
# tile / VMEM configuration
# --------------------------------------------------------------------------
def _choose_config(M, N, Kp, in_dtype, out_dtype, tm, tn, tk, weight_buffers):
    in_item = jnp.dtype(in_dtype).itemsize
    out_item = jnp.dtype(out_dtype).itemsize
    sub = _sublane_multiple(in_dtype)

    vmem_cap = _vmem_capacity_bytes()
    big_vmem = vmem_cap > (96 << 20)      # 128-MiB parts (v5e/v6e) vs 64-MiB v7x
    skinny = _round_up(M, sub) <= 64      # decode / GEMV-like: weight-streaming bound

    # Roofline-ish defaults.  tm >= tn: the (K, N) weight is re-streamed
    # ceil(M/tm) times while x is re-streamed ceil(N/tn) times.
    if skinny:
        d_tm, d_tn, d_tk = _round_up(M, sub), 1024, (2048 if big_vmem else 1024)
    elif in_item <= 2:                    # bf16 / fp8: keep MXU fed from VMEM
        d_tm, d_tn, d_tk = (1536, 1536, 1024) if big_vmem else (1024, 1024, 1024)
    else:                                 # f32 (emulated MXU, lower flop roof)
        d_tm, d_tn, d_tk = (1024, 512, 1024) if big_vmem else (1024, 512, 512)
    tm = d_tm if tm is None else tm
    tn = d_tn if tn is None else tn
    tk = d_tk if tk is None else tk

    tm = min(_round_up(tm, sub), _round_up(M, sub))
    tn = min(_round_up(tn, 128), _round_up(N, 128))
    # tk must divide the 128-aligned padded K so the reduction never sees an
    # un-zeroed tail.
    tk = _largest_aligned_divisor(Kp, max(128, _round_up(tk, 128)))

    wbufs = weight_buffers if weight_buffers is not None else (3 if skinny else 2)

    budget = int(vmem_cap * 0.6)          # leave headroom for compiler scratch
    while True:
        n_k = Kp // tk
        use_scratch = n_k > 1 and jnp.dtype(out_dtype) != jnp.dtype(jnp.float32)
        need = (
            2 * tm * tk * in_item         # x tiles (double-buffered)
            + wbufs * tk * tn * in_item   # weight tiles
            + 2 * tm * tn * out_item      # output tiles (double-buffered)
            + (tm * tn * 4 if use_scratch else 0)
            + 2 * tn * 4                  # bias (upper bound)
        )
        if need <= budget:
            break
        if tk >= max(tm, tn) and tk > 128:
            tk = _largest_aligned_divisor(Kp, max(128, tk // 2))
        elif tn >= tm and tn > 128:
            tn = max(128, _round_up(tn // 2, 128))
        elif tm > sub:
            tm = max(sub, _round_up(tm // 2, sub))
        else:
            break

    # VMEM limit: enough for the chosen tiles, capped at ~75% of physical VMEM
    # (≈48 MiB on v7x, ≈96 MiB on 128-MiB parts) so internal scratch still fits.
    ceiling = (vmem_cap * 3) // 4
    vmem_limit = int(min(ceiling, max(32 << 20, 2 * need)))
    return tm, tn, tk, n_k, use_scratch, wbufs, vmem_limit


# --------------------------------------------------------------------------
# public forward
# --------------------------------------------------------------------------
def linear_pallas(x, weight, bias=None, *, tm=None, tn=None, tk=None,
                  compute_dtype=None, weight_buffers=None):
    """Forward of Linear: y = x @ weight + bias.

    x:      (..., K)
    weight: (K, N) or (round_up(K, 128), N) if pre-padded along K (see Linear)
    bias:   (N,), (1, N) or None
    compute_dtype: optional MXU input dtype (e.g. jnp.bfloat16) for f32
        workloads that tolerate it; accumulation stays f32 and the output
        keeps x's original dtype.
    """
    out_dtype = x.dtype
    batch_shape = x.shape[:-1]
    K = x.shape[-1]
    N = weight.shape[-1]
    x2 = x.reshape(-1, K)
    M = x2.shape[0]

    if compute_dtype is not None:
        x2 = x2.astype(compute_dtype)
        weight = weight.astype(compute_dtype)
    in_dtype = x2.dtype

    # K is the only axis that must be physically zero-padded (a garbage tail
    # would corrupt the accumulation); M/N boundary tiles are masked by Pallas.
    Kp = _round_up(K, 128)
    if weight.shape[0] == Kp:
        wp = weight                                        # pre-padded (Linear)
    elif weight.shape[0] == K:
        wp = weight if Kp == K else jnp.pad(weight, ((0, Kp - K), (0, 0)))
    else:
        raise ValueError(
            f"weight.shape[0]={weight.shape[0]} must be K={K} or {Kp}")
    xp = x2 if Kp == K else jnp.pad(x2, ((0, 0), (0, Kp - K)))

    has_bias = bias is not None
    bp = bias.astype(jnp.float32).reshape(1, N) if has_bias else None

    tm_, tn_, tk_, n_k, use_scratch, wbufs, vmem_limit = _choose_config(
        M, N, Kp, in_dtype, out_dtype, tm, tn, tk, weight_buffers)

    grid_m = pl.cdiv(M, tm_)
    grid_n = pl.cdiv(N, tn_)
    in_item = jnp.dtype(in_dtype).itemsize
    out_item = jnp.dtype(out_dtype).itemsize
    cost = pl.CostEstimate(
        flops=2 * M * N * K,
        transcendentals=0,
        bytes_accessed=(M * Kp + Kp * N) * in_item + M * N * out_item
        + (N * 4 if has_bias else 0),
    )
    out_shape = jax.ShapeDtypeStruct((M, N), out_dtype)
    params = pltpu.CompilerParams(
        dimension_semantics=(("parallel", "parallel") if n_k == 1
                             else ("parallel", "parallel", "arbitrary")),
        vmem_limit_bytes=vmem_limit,
    )

    def _call(wbufs_):
        if n_k == 1:
            x_spec = pl.BlockSpec((tm_, tk_), lambda i, j: (i, 0))
            w_spec = _weight_block_spec((tk_, tn_), lambda i, j: (0, j), wbufs_)
            b_spec = pl.BlockSpec((1, tn_), lambda i, j: (0, j))
            o_spec = pl.BlockSpec((tm_, tn_), lambda i, j: (i, j))
            grid = (grid_m, grid_n)
            kernel = _kernel_1k_bias if has_bias else _kernel_1k_nobias
            scratch = ()
        else:
            x_spec = pl.BlockSpec((tm_, tk_), lambda i, j, k: (i, k))
            w_spec = _weight_block_spec((tk_, tn_), lambda i, j, k: (k, j), wbufs_)
            b_spec = pl.BlockSpec((1, tn_), lambda i, j, k: (0, j))
            o_spec = pl.BlockSpec((tm_, tn_), lambda i, j, k: (i, j))
            grid = (grid_m, grid_n, n_k)
            if use_scratch:
                kernel = (_kernel_multik_scratch_bias if has_bias
                          else _kernel_multik_scratch_nobias)
                scratch = (pltpu.VMEM((tm_, tn_), jnp.float32),)
            else:  # float32 output: accumulate straight into o_ref
                kernel = (_kernel_multik_accout_bias if has_bias
                          else _kernel_multik_accout_nobias)
                scratch = ()
        in_specs = [x_spec, w_spec] + ([b_spec] if has_bias else [])
        args = (xp, wp) + ((bp,) if has_bias else ())
        return pl.pallas_call(
            kernel,
            out_shape=out_shape,
            grid_spec=pltpu.PrefetchScalarGridSpec(
                num_scalar_prefetch=0,
                grid=grid,
                in_specs=in_specs,
                out_specs=o_spec,
                scratch_shapes=scratch,
            ),
            compiler_params=params,
            cost_estimate=cost,
        )(*args)

    if wbufs > 2:
        try:
            out = _call(wbufs)
        except Exception:
            out = _call(2)   # graceful fallback if deep buffering is unsupported
    else:
        out = _call(2)

    return out.reshape(*batch_shape, N)


class Linear:
    """JAX/Pallas equivalent of the TritonHub Linear module (forward only)."""

    def __init__(self, in_features, out_features, bias=True, *, key,
                 dtype=jnp.float32):
        self.in_features = in_features
        self.out_features = out_features
        kw, kb = jax.random.split(key)
        # torch.nn.init.kaiming_uniform_(weight, a=sqrt(5)) on the TritonHub
        # (in_features, out_features) tensor: torch's fan_in for a 2-D tensor
        # is size(1) == out_features here (intentional TritonHub quirk).
        a = math.sqrt(5)
        fan_in = out_features
        gain = math.sqrt(2.0 / (1.0 + a * a))
        bound_w = gain * math.sqrt(3.0 / fan_in)
        self.weight = jax.random.uniform(
            kw, (in_features, out_features), dtype, -bound_w, bound_w)
        if bias:
            bound_b = 1.0 / math.sqrt(fan_in) if fan_in > 0 else 0.0
            self.bias = jax.random.uniform(kb, (out_features,), dtype,
                                           -bound_b, bound_b)
        else:
            self.bias = None

        # Pre-layout parameters once (amortized out of every forward call):
        # zero-pad the reduction dim of the weight to a 128 multiple and keep
        # the bias as an f32 (1, N) row.
        Kp = _round_up(in_features, 128)
        self._weight_prepped = (
            self.weight if Kp == in_features
            else jnp.pad(self.weight, ((0, Kp - in_features), (0, 0))))
        self._bias_prepped = (
            None if self.bias is None
            else self.bias.astype(jnp.float32).reshape(1, out_features))

    def __call__(self, x):
        return linear_pallas(x, self._weight_prepped, self._bias_prepped)


# TODO(synk): backward kernels (dx / dw / db) from the TritonHub module are not
# implemented here; this covers the forward pass only.

if __name__ == "__main__":
    key = jax.random.PRNGKey(0)
    k_x, k_mod, k_a, k_w, k_b, k_s = jax.random.split(key, 6)

    # 1) Module-style call: K=32 (padded to 128 once at init), single-K path,
    #    masked M/N boundary tiles (no per-call pad/slice of out), f32.
    B, S, IN, OUT = 2, 8, 32, 48
    x = jax.random.normal(k_x, (B, S, IN), jnp.float32)
    mod = Linear(IN, OUT, bias=True, key=k_mod)
    y = jax.block_until_ready(mod(x))
    y_ref = x @ mod.weight + mod.bias
    assert y.shape == (B, S, OUT), y.shape
    assert jnp.allclose(y, y_ref, atol=1e-5, rtol=1e-5), float(
        jnp.max(jnp.abs(y - y_ref)))

    # 2) Multi-K reduction, f32 output accumulated in-place in o_ref, no bias,
    #    unaligned M (250) handled by masked boundary tiles.
    M2, K2, N2 = 250, 1024, 384
    a = jax.random.normal(k_a, (M2, K2), jnp.float32)
    w = jax.random.normal(k_w, (K2, N2), jnp.float32) * 0.05
    y2 = jax.block_until_ready(linear_pallas(a, w, None, tk=256))
    y2_ref = a @ w
    assert y2.shape == (M2, N2), y2.shape
    assert jnp.allclose(y2, y2_ref, atol=2e-3, rtol=2e-3), float(
        jnp.max(jnp.abs(y2 - y2_ref)))

    # 3) bf16 in / bf16 out: multi-K with f32 scratch accumulator + bias.
    M3, K3, N3 = 128, 512, 256
    xb = jax.random.normal(k_s, (M3, K3), jnp.float32).astype(jnp.bfloat16)
    wb = (jax.random.normal(k_w, (K3, N3), jnp.float32) * 0.05).astype(jnp.bfloat16)
    bb = (jax.random.normal(k_b, (N3,), jnp.float32) * 0.1).astype(jnp.bfloat16)
    y3 = jax.block_until_ready(linear_pallas(xb, wb, bb, tk=128))
    y3_ref = (xb.astype(jnp.float32) @ wb.astype(jnp.float32)
              + bb.astype(jnp.float32))
    assert y3.shape == (M3, N3), y3.shape
    assert jnp.allclose(y3.astype(jnp.float32), y3_ref, atol=5e-2, rtol=5e-2), float(
        jnp.max(jnp.abs(y3.astype(jnp.float32) - y3_ref)))

    # 4) Skinny-M (decode / GEMV-like): deep-buffered weight-streaming path.
    M4, K4, N4 = 4, 1024, 512
    a4 = jax.random.normal(k_a, (M4, K4), jnp.float32)
    w4 = jax.random.normal(k_w, (K4, N4), jnp.float32) * 0.05
    b4 = jax.random.normal(k_b, (N4,), jnp.float32) * 0.1
    y4 = jax.block_until_ready(linear_pallas(a4, w4, b4, tk=256))
    y4_ref = a4 @ w4 + b4
    assert y4.shape == (M4, N4), y4.shape
    assert jnp.allclose(y4, y4_ref, atol=2e-3, rtol=2e-3), float(
        jnp.max(jnp.abs(y4 - y4_ref)))

    # 5) f32 inputs with opt-in bf16 MXU compute, f32 accumulation/output.
    y5 = jax.block_until_ready(
        linear_pallas(a, w, None, tk=256, compute_dtype=jnp.bfloat16))
    assert jnp.allclose(y5, y2_ref, atol=1e-1, rtol=1e-1), float(
        jnp.max(jnp.abs(y5 - y2_ref)))

    print("KERNEL_OK")
</pallas_src>

<mosaic_0001>
module attributes {stable_mosaic.version = 11 : i64} {
  func.func @_kernel_1k_bias(%arg0: i32, %arg1: i32, %arg2: memref<16x128xf32, #tpu.memory_space<vmem>>, %arg3: memref<128x128xf32, #tpu.memory_space<vmem>>, %arg4: memref<1x128xf32, #tpu.memory_space<vmem>>, %arg5: memref<16x128xf32, #tpu.memory_space<vmem>>) attributes {dimension_semantics = [#tpu.dimension_semantics<parallel>, #tpu.dimension_semantics<parallel>], iteration_bounds = array<i64: 1, 1>, scalar_prefetch = 0 : i64, scratch_operands = 0 : i64, tpu.core_type = #tpu.core_type<tc>, window_params = [{transform_indices = @transform_0, window_bounds = array<i64: 16, 128>}, {transform_indices = @transform_1, window_bounds = array<i64: 128, 128>}, {transform_indices = @transform_2, window_bounds = array<i64: 1, 128>}, {transform_indices = @transform_3, window_bounds = array<i64: 16, 128>}]} {
    %c0 = arith.constant 0 : index
    %c0_0 = arith.constant 0 : index
    %0 = vector.load %arg2[%c0, %c0_0] : memref<16x128xf32, #tpu.memory_space<vmem>>, vector<16x128xf32>
    %c0_1 = arith.constant 0 : index
    %c0_2 = arith.constant 0 : index
    %1 = vector.load %arg3[%c0_1, %c0_2] : memref<128x128xf32, #tpu.memory_space<vmem>>, vector<128x128xf32>
    %cst = arith.constant dense<0.000000e+00> : vector<16x128xf32>
    %2 = tpu.matmul %0, %1, %cst {dimension_numbers = #tpu.dot_dimension_numbers<[1], [0], [0], [1], [0, 0, 1, 1], [], []>} : vector<16x128xf32>, vector<128x128xf32>, vector<16x128xf32> -> vector<16x128xf32>
    %c0_3 = arith.constant 0 : index
    %c0_4 = arith.constant 0 : index
    %3 = vector.load %arg4[%c0_3, %c0_4] : memref<1x128xf32, #tpu.memory_space<vmem>>, vector<1x128xf32>
    %4 = vector.broadcast %3 : vector<1x128xf32> to vector<16x128xf32>
    %5 = arith.addf %2, %4 : vector<16x128xf32>
    %c0_5 = arith.constant 0 : index
    %c0_6 = arith.constant 0 : index
    %6 = vector.load %arg5[%c0_5, %c0_6] : memref<16x128xf32, #tpu.memory_space<vmem>>, vector<16x128xf32>
    tpu.vector_store %arg5[%c0_5, %c0_6], %5 {strides = array<i32>} : memref<16x128xf32, #tpu.memory_space<vmem>>, vector<16x128xf32>,
    return
  }
  func.func @transform_0(%arg0: i32, %arg1: i32) -> (i32, i32) {
    %c0_i32 = arith.constant 0 : i32
    %c0_i32_0 = arith.constant 0 : i32
    return %arg0, %c0_i32 : i32, i32
  }
  func.func @transform_1(%arg0: i32, %arg1: i32) -> (i32, i32) {
    %c0_i32 = arith.constant 0 : i32
    %c0_i32_0 = arith.constant 0 : i32
    return %c0_i32, %arg1 : i32, i32
  }
  func.func @transform_2(%arg0: i32, %arg1: i32) -> (i32, i32) {
    %c0_i32 = arith.constant 0 : i32
    %c0_i32_0 = arith.constant 0 : i32
    return %c0_i32, %arg1 : i32, i32
  }
  func.func @transform_3(%arg0: i32, %arg1: i32) -> (i32, i32) {
    %c0_i32 = arith.constant 0 : i32
    return %arg0, %arg1 : i32, i32
  }
}

</mosaic_0001>

<bundles_post_ra>
// kernel: tpu_custom_call.1
= control target key start
LH: loop header
LB: loop body
LE: loop exit
PB: predicated region body
PF: predicated region fallthrough
CT: control target
= control target key end

     0   :  { %s209_s0 = inlined_call_operand.vmem [shape: f32[16,128], index: 0, kind: input, shape index: {}]   ;;  %s210_s1 = inlined_call_operand.vmem [shape: f32[128,48], index: 1, kind: input, shape index: {}]   ;;  %s211_s2 = inlined_call_operand.vmem [shape: f32[1,48], index: 2, kind: input, shape index: {}]   ;;  %s212_s3 = inlined_call_operand.hbm [shape: f32[16,48], index: 3, kind: output, shape index: {}]  }
   0x1   :  { %v32_v0 = vld [vmem:[%s210_s1 + $0x78] sm:$0xff]  ;;  %v31_v1 = vld [vmem:[%s210_s1 + $0x70] sm:$0xff]  ;;  %v30_v2 = vld [vmem:[%s210_s1 + $0x68] sm:$0xff] }
   0x2   :  { %37 = vmatpush.msra.mxu0 %v32_v0  ;;  %80 = vmatpush.msra.mxu1 %v32_v0  ;;  %v29_v3 = vld [vmem:[%s210_s1 + $0x60] sm:$0xff]  ;;  %v28_v4 = vld [vmem:[%s210_s1 + $0x58] sm:$0xff] }
   0x4   :  { %38 = vmatpush.msra.mxu0 %v31_v1  ;;  %81 = vmatpush.msra.mxu1 %v31_v1 }
   0x6   :  { %39 = vmatpush.msra.mxu0 %v30_v2  ;;  %82 = vmatpush.msra.mxu1 %v30_v2 }
   0x7   :  { %8 = vsyncpa [#allocation3], 0  ;;  %v27_v5 = vld [vmem:[%s210_s1 + $0x50] sm:$0xff]  ;;  %v26_v6 = vld [vmem:[%s210_s1 + $0x48] sm:$0xff]  ;;  %s126_s23 = smov [#allocation2]   ;;  %s68_s26 = sshll.u32 %s212_s3, 4  ;;  %s69_s26 = int_to_ptr.hbm [resolvable:$true] %s68_s26 }
   0x8   :  { %40 = vmatpush.msra.mxu0 %v29_v3  ;;  %83 = vmatpush.msra.mxu1 %v29_v3  ;;  %v25_v7 = vld [vmem:[%s210_s1 + $0x40] sm:$0xff]  ;;  %v24_v8 = vld [vmem:[%s210_s1 + $0x38] sm:$0xff]  ;;  %v23_v9 = vld [vmem:[%s210_s1 + $0x30] sm:$0xff]  ;;  %s128_s27 = smov 8  }
   0x9   :  { %v22_v10 = vld [vmem:[%s210_s1 + $0x28] sm:$0xff]  ;;  %v21_v11 = vld [vmem:[%s210_s1 + $0x20] sm:$0xff]  ;;  %v20_v12 = vld [vmem:[%s210_s1 + $0x18] sm:$0xff] }
   0xa   :  { %41 = vmatpush.msra.mxu0 %v28_v4  ;;  %84 = vmatpush.msra.mxu1 %v28_v4  ;;  %v19_v13 = vld [vmem:[%s210_s1 + $0x10] sm:$0xff]  ;;  %v18_v14 = vld [vmem:[%s210_s1 + $0x8] sm:$0xff]  ;;  %v17_v15 = vld [vmem:[%s210_s1] sm:$0xff]  ;;  %s66_s1 = sshll.u32 %s126_s23, 4  ;;  %s67_s1 = int_to_ptr.vmem [resolvable:$true] %s66_s1 }
   0xb   :  { %v15_v16 = vld [vmem:[%s209_s0] sm:$0xff]  ;;  %v16_v17 = vld [vmem:[%s209_s0 + $0x8] sm:$0xff]  ;;  %s127_s0 = smov 128  }
   0xc   :  { %42 = vmatpush.msra.mxu0 %v27_v5  ;;  %85 = vmatpush.msra.mxu1 %v27_v5  ;;  %v99_v18 = vld [vmem:[%s211_s2] ss:$0 sm:$0xff] }
   0xe   :  { %43 = vmatpush.msra.mxu0 %v26_v6  ;;  %86 = vmatpush.msra.mxu1 %v26_v6 }
  0x10   :  { %44 = vmatpush.msra.mxu0 %v25_v7  ;;  %87 = vmatpush.msra.mxu1 %v25_v7 }
  0x12   :  { %45 = vmatpush.msra.mxu0 %v24_v8  ;;  %88 = vmatpush.msra.mxu1 %v24_v8 }
  0x14   :  { %46 = vmatpush.msra.mxu0 %v23_v9  ;;  %89 = vmatpush.msra.mxu1 %v23_v9 }
  0x16   :  { %47 = vmatpush.msra.mxu0 %v22_v10  ;;  %90 = vmatpush.msra.mxu1 %v22_v10 }
  0x18   :  { %48 = vmatpush.msra.mxu0 %v21_v11  ;;  %91 = vmatpush.msra.mxu1 %v21_v11 }
  0x1a   :  { %49 = vmatpush.msra.mxu0 %v20_v12  ;;  %92 = vmatpush.msra.mxu1 %v20_v12 }
  0x1c   :  { %50 = vmatpush.msra.mxu0 %v19_v13  ;;  %93 = vmatpush.msra.mxu1 %v19_v13 }
  0x1e   :  { %51 = vmatpush.msra.mxu0 %v18_v14  ;;  %94 = vmatpush.msra.mxu1 %v18_v14 }
  0x20   :  { %52 = vmatpush.msra.mxu0 %v17_v15  ;;  %95 = vmatpush.msra.mxu1 %v17_v15 }
  0x21   :  { %53 = vmatmul.f32.vlgmr.msra.gmra.mxu0 %v15_v16  ;;  %56 = vmatmul.f32.vlgmr.msra.gmra.mxu1 %v16_v17 }
  0x9e   :  { %v54_v19 = vpop.f32.mrf.mxu0  ;;  %v57_v20 = vpop.f32.mrf.mxu1 }
  0x9f   :  { %v55_v21 = vadd.f32 %v99_v18, %v54_v19  ;;  %v58_v22 = vadd.f32 %v99_v18, %v57_v20 }
  0xa1   :  { %60 = vst [vmem:[#allocation2] sm:$0xff] %v55_v21 }
  0xa2   :  { %61 = vst [vmem:[#allocation2 + $0x8] sm:$0xff] %v58_v22 }
  0xa3   :  { %74 = dma.vmem_to_hbm [thread:$0]  %s67_s1, 256, %s69_s26, [#allocation3], %s127_s0, %s127_s0, %s128_s27  }
  0xa4   :  { %124 = dma.done.wait [#allocation3], 256  }
  0xa5   :  { %125 = vsyncadd [#allocation3], 4294967040 }
  0xa6   :  { %79 = vsyncpa [#allocation3], 1 }

</bundles_post_ra>
